<compile_context>
chip_gen: v5e
topology: v5e:2x2
jax: 0.10.0
libtpu: 0.0.40
codegen_flags: <defaults>
</compile_context>

<pallas_src>
import jax
import jax.numpy as jnp
from jax.experimental import pallas as pl
from jax.experimental.pallas import tpu as pltpu

LANES = 128
SUBLANES = 8
MAX_CHUNK_ROWS = 512          # in-kernel sub-chunk: (512,128) f32 = 256 KiB per temporary


def _round_up(x, n):
    return ((x + n - 1) // n) * n


def _device_kind():
    try:
        return jax.devices()[0].device_kind.lower()
    except Exception:
        return ""


def _tensorcores_per_chip():
    # Only v7x exposes two TensorCores behind one device; elsewhere a leading "parallel"
    # axis would just be a serial outer loop plus a wasted duplicate tile.
    return 2 if "v7" in _device_kind() else 1


def _row_tile_cap():
    kind = _device_kind()
    if "v6" in kind or "v7" in kind:
        return 4096            # 2 inputs x 2 bufs x 4096x128x4B = 8 MiB of input buffers
    return 2048                # conservative for v5e's smaller scoped-VMEM default


def _choose_tile(m_rows, cap_rows):
    """Rows per grid step (tm) and in-kernel chunk rows. chunk divides tm; both % 8 == 0."""
    if m_rows <= MAX_CHUNK_ROWS:
        tm = min(_round_up(m_rows, SUBLANES),
                 max(SUBLANES, (cap_rows // SUBLANES) * SUBLANES))
        return tm, tm                       # single chunk == tile
    cap = max(MAX_CHUNK_ROWS, (cap_rows // MAX_CHUNK_ROWS) * MAX_CHUNK_ROWS)
    tm = min(cap, _round_up(m_rows, MAX_CHUNK_ROWS))
    return tm, MAX_CHUNK_ROWS


def _focal_elems_jax(x, y, gamma, alpha):
    """Exact per-element focal BCE-with-logits (used for the ragged tail + reference)."""
    x = x.astype(jnp.float32)
    y = y.astype(jnp.float32)
    bce = jnp.maximum(x, 0.0) - x * y + jnp.log1p(jnp.exp(-jnp.abs(x)))
    p = jax.nn.sigmoid(x)
    p_t = y * p + (1.0 - y) * (1.0 - p)
    af = y * alpha + (1.0 - y) * (1.0 - alpha)
    return bce * af * (1.0 - p_t) ** gamma


def _focal_loss_kernel(gamma, alpha, tm, chunk, n_j, m_rows, needs_mask):
    n_chunks = tm // chunk

    def kernel(pred_ref, true_ref, out_ref):
        j = pl.program_id(1)

        @pl.when(j == 0)
        def _():
            out_ref[...] = jnp.zeros_like(out_ref)

        t = pl.program_id(0) * n_j + j           # unclamped global tile index
        row0 = t * tm                            # first global row covered by this tile

        def tile_partial(masked):
            if masked:
                # Hoisted out of the (unrolled) chunk loop; JAX does not CSE broadcasts.
                row_iota = jax.lax.broadcasted_iota(jnp.int32, (chunk, LANES), 0)

            def body(c, acc):
                r = pl.multiple_of(c * chunk, SUBLANES)
                x = pred_ref[pl.ds(r, chunk), :].astype(jnp.float32)
                y = true_ref[pl.ds(r, chunk), :].astype(jnp.float32)

                # Stable BCE-with-logits + sigmoid sharing exp(-|x|); EUP approx reciprocal.
                e = jnp.exp(-jnp.abs(x))
                bce = jnp.maximum(x, 0.0) - x * y + jnp.log(1.0 + e)   # e <= 1: log1p not needed
                rcp = pl.reciprocal(1.0 + e, approx=True)
                p = jnp.where(x >= 0.0, rcp, e * rcp)                  # sigmoid(x)

                # Multiplicative forms kept (correct for soft labels as well).
                p_t = y * p + (1.0 - y) * (1.0 - p)
                alpha_factor = y * alpha + (1.0 - y) * (1.0 - alpha)
                z = jnp.maximum(1.0 - p_t, 0.0)    # guard approx-recip overshoot -> sqrt NaN
                if gamma == 1.5:
                    modulating = z * jnp.sqrt(z)                       # z**1.5, one EUP push
                else:
                    modulating = jnp.power(z, gamma)
                loss = bce * alpha_factor * modulating

                if masked:
                    rows = row_iota + (row0 + r)
                    loss = jnp.where(rows < m_rows, loss, 0.0)         # select (NaN-safe), not mask*loss

                # (chunk,128) -> (chunk/8, 8, 128) is vreg-tile aligned; sum(0) is pure VALU adds.
                return acc + loss.reshape(chunk // SUBLANES, SUBLANES, LANES).sum(axis=0)

            return jax.lax.fori_loop(
                0, n_chunks, body, jnp.zeros((SUBLANES, LANES), jnp.float32), unroll=True)

        if needs_mask:
            # Only the partial tail tile / clamped overflow tile pays for the masking ops.
            @pl.when(row0 + tm <= m_rows)
            def _():
                out_ref[...] += tile_partial(False)[None]

            @pl.when(row0 + tm > m_rows)
            def _():
                out_ref[...] += tile_partial(True)[None]
        else:
            out_ref[...] += tile_partial(False)[None]

    return kernel


def yolop_focal_loss(pred, true, gamma=1.5, alpha=0.25, max_rows_per_tile=None):
    """YOLOPFocalLoss.forward with loss_fcn = BCEWithLogitsLoss(reduction='mean')."""
    assert pred.shape == true.shape
    total = pred.size
    assert total > 0

    pred_flat = pred.reshape(-1)                 # zero-copy (contiguous row-major)
    true_flat = true.reshape(-1)

    m_rows = total // LANES                      # whole lane-dense rows handled by the kernel
    bulk = m_rows * LANES
    tail = total - bulk                          # < 128 ragged elements

    tail_sum = jnp.float32(0.0)
    if tail:
        # Tiny plain-JAX epilogue instead of a full-array pad copy of both inputs.
        tail_sum = jnp.sum(_focal_elems_jax(pred_flat[bulk:], true_flat[bulk:], gamma, alpha))

    if m_rows == 0:
        return tail_sum / jnp.float32(total)

    assert m_rows < 2**31                        # in-kernel row index is int32

    pred2d = (pred_flat if tail == 0 else pred_flat[:bulk]).reshape(m_rows, LANES)
    true2d = (true_flat if tail == 0 else true_flat[:bulk]).reshape(m_rows, LANES)

    cap_rows = int(max_rows_per_tile) if max_rows_per_tile else _row_tile_cap()
    tm, chunk = _choose_tile(m_rows, cap_rows)
    n_tiles = pl.cdiv(m_rows, tm)
    n_par = 2 if (_tensorcores_per_chip() >= 2 and n_tiles >= 2) else 1
    n_j = pl.cdiv(n_tiles, n_par)
    needs_mask = (n_par * n_j * tm) > m_rows     # static: partial tail / overflow tiles exist

    def in_index(p_, j_):
        # Clamp so the overflow step of the second core's slice (odd tile counts) stays in
        # range; its contribution is fully masked out in-kernel.
        return (jnp.minimum(p_ * n_j + j_, n_tiles - 1), 0)

    if n_par == 2:
        dim_sems = (pltpu.CORE_PARALLEL, pltpu.ARBITRARY)   # real cross-TC split on v7x
    else:
        dim_sems = ("arbitrary", "arbitrary")

    in_itemsize = pred2d.dtype.itemsize + true2d.dtype.itemsize
    vmem_limit = 2 * in_itemsize * tm * LANES + (12 << 20)  # 2 pipeline bufs + temporaries

    cost = pl.CostEstimate(
        flops=25 * bulk,
        transcendentals=4 * bulk,
        bytes_accessed=in_itemsize * bulk + n_par * SUBLANES * LANES * 4,
    )

    partials = pl.pallas_call(
        _focal_loss_kernel(float(gamma), float(alpha), tm, chunk, n_j, m_rows, needs_mask),
        out_shape=jax.ShapeDtypeStruct((n_par, SUBLANES, LANES), jnp.float32),
        grid_spec=pltpu.PrefetchScalarGridSpec(
            num_scalar_prefetch=0,
            grid=(n_par, n_j),
            in_specs=[
                pl.BlockSpec((tm, LANES), in_index),
                pl.BlockSpec((tm, LANES), in_index),
            ],
            out_specs=pl.BlockSpec((1, SUBLANES, LANES), lambda p_, j_: (p_, 0, 0)),
        ),
        compiler_params=pltpu.CompilerParams(
            dimension_semantics=dim_sems,
            vmem_limit_bytes=int(vmem_limit),
        ),
        cost_estimate=cost,
    )(pred2d, true2d)

    # 'mean' reduction: tiny cross-lane reduce + scale kept out of the hot loop.
    return (jnp.sum(partials) + tail_sum) / jnp.float32(total)


def _reference(pred, true, gamma=1.5, alpha=0.25):
    return jnp.mean(_focal_elems_jax(pred, true, gamma, alpha))


if __name__ == "__main__":
    key = jax.random.PRNGKey(0)
    ks = jax.random.split(key, 6)

    # Case 1: small YOLOP detection-head-style objectness map (lane-aligned, single tile).
    pred1 = jax.random.normal(ks[0], (2, 4, 16, 16), dtype=jnp.float32)             # logits
    true1 = (jax.random.uniform(ks[1], (2, 4, 16, 16)) > 0.8).astype(jnp.float32)   # {0,1}
    loss1 = jax.block_until_ready(yolop_focal_loss(pred1, true1, gamma=1.5, alpha=0.25))
    ref1 = _reference(pred1, true1)
    assert jnp.allclose(loss1, ref1, rtol=5e-3, atol=1e-6), (loss1, ref1)

    # Case 2: element count not a multiple of 128 -> exercises the plain-JAX ragged tail
    # plus the masked partial kernel tile.
    pred2 = jax.random.normal(ks[2], (2, 3, 7, 5), dtype=jnp.float32)
    true2 = (jax.random.uniform(ks[3], (2, 3, 7, 5)) > 0.8).astype(jnp.float32)
    loss2 = jax.block_until_ready(yolop_focal_loss(pred2, true2))
    ref2 = _reference(pred2, true2)
    assert jnp.allclose(loss2, ref2, rtol=5e-3, atol=1e-6), (loss2, ref2)

    # Case 3: bf16 targets (exact for {0,1} labels, narrower HBM stream) with a multi-tile
    # grid: accumulation across grid steps, an unmasked full tile and a masked tail tile
    # (max_rows_per_tile shrinks the tile so the path is exercised at small size).
    pred3 = jax.random.normal(ks[4], (2, 8, 72, 64), dtype=jnp.float32)
    true3 = (jax.random.uniform(ks[5], (2, 8, 72, 64)) > 0.8).astype(jnp.bfloat16)
    loss3 = jax.block_until_ready(yolop_focal_loss(pred3, true3, max_rows_per_tile=512))
    ref3 = _reference(pred3, true3.astype(jnp.float32))
    assert jnp.allclose(loss3, ref3, rtol=5e-3, atol=1e-6), (loss3, ref3)

    print("KERNEL_OK")
</pallas_src>

<mosaic_0001>
module attributes {stable_mosaic.version = 11 : i64} {
  func.func @kernel(%arg0: i32, %arg1: i32, %arg2: memref<16x128xf32, #tpu.memory_space<vmem>>, %arg3: memref<16x128xf32, #tpu.memory_space<vmem>>, %arg4: memref<1x8x128xf32, #tpu.memory_space<vmem>>) attributes {dimension_semantics = [#tpu.dimension_semantics<arbitrary>, #tpu.dimension_semantics<arbitrary>], iteration_bounds = array<i64: 1, 1>, scalar_prefetch = 0 : i64, scratch_operands = 0 : i64, tpu.core_type = #tpu.core_type<tc>, window_params = [{transform_indices = @transform_0, window_bounds = array<i64: 16, 128>}, {transform_indices = @transform_1, window_bounds = array<i64: 16, 128>}, {transform_indices = @transform_2, window_bounds = array<i64: 1, 8, 128>}]} {
    %c0_i32 = arith.constant 0 : i32
    %0 = arith.cmpi eq, %arg1, %c0_i32 : i32
    %1 = arith.extui %0 : i1 to i32
    %c0_i32_0 = arith.constant 0 : i32
    %2 = arith.cmpi ne, %1, %c0_i32_0 : i32
    scf.if %2 {
      %cst_22 = arith.constant 0.000000e+00 : f32
      %58 = vector.broadcast %cst_22 : f32 to vector<1x8x128xf32>
      %c0_23 = arith.constant 0 : index
      %c0_24 = arith.constant 0 : index
      %c0_25 = arith.constant 0 : index
      %59 = vector.load %arg4[%c0_23, %c0_24, %c0_25] : memref<1x8x128xf32, #tpu.memory_space<vmem>>, vector<1x8x128xf32>
      tpu.vector_store %arg4[%c0_23, %c0_24, %c0_25], %58 {strides = array<i32>} : memref<1x8x128xf32, #tpu.memory_space<vmem>>, vector<1x8x128xf32>,
    } else {
    }
    %c0 = arith.constant 0 : index
    %c0_1 = arith.constant 0 : index
    %c0_2 = arith.constant 0 : index
    %3 = vector.load %arg4[%c0, %c0_1, %c0_2] : memref<1x8x128xf32, #tpu.memory_space<vmem>>, vector<1x8x128xf32>
    %cst = arith.constant 0.000000e+00 : f32
    %4 = vector.broadcast %cst : f32 to vector<8x128xf32>
    %c0_i32_3 = arith.constant 0 : i32
    %c16_i32 = arith.constant 16 : i32
    %5 = arith.muli %c0_i32_3, %c16_i32 : i32
    %6 = tpu.assume_multiple %5, 8 : i32
    %7 = arith.index_cast %6 : i32 to index
    %c0_4 = arith.constant 0 : index
    %8 = vector.load %arg2[%7, %c0_4] : memref<16x128xf32, #tpu.memory_space<vmem>>, vector<16x128xf32>
    %9 = arith.index_cast %6 : i32 to index
    %c0_5 = arith.constant 0 : index
    %10 = vector.load %arg3[%9, %c0_5] : memref<16x128xf32, #tpu.memory_space<vmem>>, vector<16x128xf32>
    %11 = math.absf %8 : vector<16x128xf32>
    %cst_6 = arith.constant 0.000000e+00 : f32
    %12 = vector.broadcast %cst_6 : f32 to vector<16x128xf32>
    %13 = arith.subf %12, %11 : vector<16x128xf32>
    %14 = math.exp %13 : vector<16x128xf32>
    %cst_7 = arith.constant 0.000000e+00 : f32
    %15 = vector.broadcast %cst_7 : f32 to vector<16x128xf32>
    %16 = arith.maximumf %8, %15 : vector<16x128xf32>
    %17 = arith.mulf %8, %10 : vector<16x128xf32>
    %18 = arith.subf %16, %17 : vector<16x128xf32>
    %cst_8 = arith.constant 1.000000e+00 : f32
    %19 = vector.broadcast %cst_8 : f32 to vector<16x128xf32>
    %20 = arith.addf %19, %14 : vector<16x128xf32>
    %21 = math.log %20 : vector<16x128xf32>
    %22 = arith.addf %18, %21 : vector<16x128xf32>
    %cst_9 = arith.constant 1.000000e+00 : f32
    %23 = vector.broadcast %cst_9 : f32 to vector<16x128xf32>
    %24 = arith.addf %23, %14 : vector<16x128xf32>
    %25 = tpu.reciprocal %24 {approx = true} : vector<16x128xf32> -> vector<16x128xf32>
    %cst_10 = arith.constant 0.000000e+00 : f32
    %26 = vector.broadcast %cst_10 : f32 to vector<16x128xf32>
    %27 = arith.cmpf oge, %8, %26 : vector<16x128xf32>
    %28 = arith.mulf %14, %25 : vector<16x128xf32>
    %29 = arith.select %27, %25, %28 : vector<16x128xi1>, vector<16x128xf32>
    %30 = arith.mulf %10, %29 : vector<16x128xf32>
    %cst_11 = arith.constant 1.000000e+00 : f32
    %31 = vector.broadcast %cst_11 : f32 to vector<16x128xf32>
    %32 = arith.subf %31, %10 : vector<16x128xf32>
    %cst_12 = arith.constant 1.000000e+00 : f32
    %33 = vector.broadcast %cst_12 : f32 to vector<16x128xf32>
    %34 = arith.subf %33, %29 : vector<16x128xf32>
    %35 = arith.mulf %32, %34 : vector<16x128xf32>
    %36 = arith.addf %30, %35 : vector<16x128xf32>
    %cst_13 = arith.constant 2.500000e-01 : f32
    %37 = vector.broadcast %cst_13 : f32 to vector<16x128xf32>
    %38 = arith.mulf %10, %37 : vector<16x128xf32>
    %cst_14 = arith.constant 1.000000e+00 : f32
    %39 = vector.broadcast %cst_14 : f32 to vector<16x128xf32>
    %40 = arith.subf %39, %10 : vector<16x128xf32>
    %cst_15 = arith.constant 7.500000e-01 : f32
    %41 = vector.broadcast %cst_15 : f32 to vector<16x128xf32>
    %42 = arith.mulf %40, %41 : vector<16x128xf32>
    %43 = arith.addf %38, %42 : vector<16x128xf32>
    %cst_16 = arith.constant 1.000000e+00 : f32
    %44 = vector.broadcast %cst_16 : f32 to vector<16x128xf32>
    %45 = arith.subf %44, %36 : vector<16x128xf32>
    %cst_17 = arith.constant 0.000000e+00 : f32
    %46 = vector.broadcast %cst_17 : f32 to vector<16x128xf32>
    %47 = arith.maximumf %45, %46 : vector<16x128xf32>
    %48 = math.sqrt %47 : vector<16x128xf32>
    %49 = arith.mulf %47, %48 : vector<16x128xf32>
    %50 = arith.mulf %22, %43 : vector<16x128xf32>
    %51 = arith.mulf %50, %49 : vector<16x128xf32>
    %52 = vector.shape_cast %51 : vector<16x128xf32> to vector<2x8x128xf32>
    %cst_18 = arith.constant dense<0.000000e+00> : vector<8x128xf32>
    %53 = vector.multi_reduction <add>, %52, %cst_18 [0] : vector<2x8x128xf32> to vector<8x128xf32>
    %54 = arith.addf %4, %53 : vector<8x128xf32>
    %c1_i32 = arith.constant 1 : i32
    %55 = vector.shape_cast %54 : vector<8x128xf32> to vector<1x8x128xf32>
    %56 = arith.addf %3, %55 : vector<1x8x128xf32>
    %c0_19 = arith.constant 0 : index
    %c0_20 = arith.constant 0 : index
    %c0_21 = arith.constant 0 : index
    %57 = vector.load %arg4[%c0_19, %c0_20, %c0_21] : memref<1x8x128xf32, #tpu.memory_space<vmem>>, vector<1x8x128xf32>
    tpu.vector_store %arg4[%c0_19, %c0_20, %c0_21], %56 {strides = array<i32>} : memref<1x8x128xf32, #tpu.memory_space<vmem>>, vector<1x8x128xf32>,
    return
  }
  func.func @transform_0(%arg0: i32, %arg1: i32) -> (i32, i32) {
    %c1_i32 = arith.constant 1 : i32
    %0 = arith.muli %arg0, %c1_i32 : i32
    %1 = arith.addi %0, %arg1 : i32
    %c0_i32 = arith.constant 0 : i32
    %2 = arith.minsi %1, %c0_i32 : i32
    %c0_i32_0 = arith.constant 0 : i32
    %c0_i32_1 = arith.constant 0 : i32
    return %2, %c0_i32_0 : i32, i32
  }
  func.func @transform_1(%arg0: i32, %arg1: i32) -> (i32, i32) {
    %c1_i32 = arith.constant 1 : i32
    %0 = arith.muli %arg0, %c1_i32 : i32
    %1 = arith.addi %0, %arg1 : i32
    %c0_i32 = arith.constant 0 : i32
    %2 = arith.minsi %1, %c0_i32 : i32
    %c0_i32_0 = arith.constant 0 : i32
    %c0_i32_1 = arith.constant 0 : i32
    return %2, %c0_i32_0 : i32, i32
  }
  func.func @transform_2(%arg0: i32, %arg1: i32) -> (i32, i32, i32) {
    %c0_i32 = arith.constant 0 : i32
    %c0_i32_0 = arith.constant 0 : i32
    %c0_i32_1 = arith.constant 0 : i32
    return %arg0, %c0_i32, %c0_i32_0 : i32, i32, i32
  }
}

</mosaic_0001>

<bundles_post_ra>
// kernel: tpu_custom_call.1
= control target key start
LH: loop header
LB: loop body
LE: loop exit
PB: predicated region body
PF: predicated region fallthrough
CT: control target
= control target key end

     0   :  { %7 = vsyncpa [#allocation3], 0  ;;  %s315_s0 = inlined_call_operand.hbm [shape: f32[16,128], index: 0, kind: input, shape index: {}]   ;;  %s316_s1 = inlined_call_operand.hbm [shape: f32[16,128], index: 1, kind: input, shape index: {}]   ;;  %s317_s2 = inlined_call_operand.hbm [shape: f32[1,8,128], index: 2, kind: output, shape index: {}]  }
   0x1   :  { %8 = vsyncpa [#allocation6], 0 }
   0x2   :  { %9 = vsyncpa [#allocation4], 0  ;;  %s20_s11 = sshll.u32 %s315_s0, 4  ;;  %s280_s12 = smov [#allocation2]   ;;  %s21_s11 = int_to_ptr.hbm [resolvable:$true] %s20_s11 }
   0x3   :  { %s22_s13 = sshll.u32 %s280_s12, 4  ;;  %s39_s16 = sshll.u32 %s316_s1, 4  ;;  %s23_s13 = int_to_ptr.vmem [resolvable:$true] %s22_s13  ;;  %s40_s16 = int_to_ptr.hbm [resolvable:$true] %s39_s16 }
   0x4   :  { %s281_s17 = smov 128   ;;  %s282_s18 = smov 8  }
   0x5   :  { %28 = dma.hbm_to_vmem [thread:$0]  %s21_s11, 256, %s23_s13, [#allocation3], %s281_s17, %s281_s17, %s282_s18  }
   0x6   :  { %s283_s19 = smov [#allocation5]  }
   0x7   :  { %s41_s20 = sshll.u32 %s283_s19, 4  ;;  %s42_s20 = int_to_ptr.vmem [resolvable:$true] %s41_s20 }
   0x8   :  { %47 = dma.hbm_to_vmem [thread:$0]  %s40_s16, 256, %s42_s20, [#allocation6], %s281_s17, %s281_s17, %s282_s18  }
   0x9   :  { %274 = dma.done.wait [#allocation3], 256  }
   0xa   :  { %275 = vsyncadd [#allocation3], 4294967040 }
   0xb   :  { %276 = dma.done.wait [#allocation6], 256  }
   0xc   :  { %277 = vsyncadd [#allocation6], 4294967040  ;;  %v70_v0 = vld [vmem:[#allocation2] sm:$0xff]  ;;  %v306_v1 = vld [vmem:[#allocation2 + $0x8] sm:$0xff]  ;;  %s284_s0 = smov [#allocation7]   ;;  %s165_s23 = sshll.u32 %s317_s2, 4  ;;  %s166_s23 = int_to_ptr.hbm [resolvable:$true] %s165_s23 }
   0xd   :  { %v74_v2 = vand.u32 2147483647, %v70_v0  ;;  %v75_v3 = vand.u32 2147483647, %v306_v1  ;;  %v72_v12 = vld [vmem:[#allocation5] sm:$0xff]  ;;  %v73_v14 = vld [vmem:[#allocation5 + $0x8] sm:$0xff] }
   0xe   :  { %vm98_vm0 = vcmp.ge.f32.partialorder %v70_v0, 0.0  ;;  %vm99_vm1 = vcmp.ge.f32.partialorder %v306_v1, 0.0  ;;  %v106_v18 = vsub.f32 1.0, %v72_v12  ;;  %v107_v20 = vsub.f32 1.0, %v73_v14  ;;  %s163_s1 = sshll.u32 %s284_s0, 4  ;;  %s164_s1 = int_to_ptr.vmem [resolvable:$true] %s163_s1 }
   0xf   :  { %v76_v4 = vsub.f32 0.0, %v74_v2  ;;  %v77_v5 = vsub.f32 0.0, %v75_v3  ;;  %v82_v35 = vmax.f32 %v70_v0, 0.0  ;;  %v84_v36 = vmul.f32 %v72_v12, %v70_v0 }
  0x10   :  { %v83_v40 = vmax.f32 %v306_v1, 0.0  ;;  %v85_v41 = vmul.f32 %v73_v14, %v306_v1  ;;  %v114_v46 = vmul.f32 0.25, %v72_v12  ;;  %v115_v47 = vmul.f32 0.25, %v73_v14 }
  0x11   :  { %v78_v6 = vmul.f32 1.442695, %v76_v4  ;;  %v80_v7 = vmul.f32 1.442695, %v77_v5  ;;  %v86_v45 = vsub.f32 %v82_v35, %v84_v36  ;;  %v116_v50 = vmul.f32 0.75, %v106_v18 }
  0x12   :  { %v117_v51 = vmul.f32 0.75, %v107_v20  ;;  %v87_v53 = vsub.f32 %v83_v40, %v85_v41 }
  0x13   :  { %186 = vpow2.f32 %v78_v6  ;;  %v118_v59 = vadd.f32 %v116_v50, %v114_v46 }
  0x14   :  { %188 = vpow2.f32 %v80_v7  ;;  %v119_v60 = vadd.f32 %v117_v51, %v115_v47 }
  0x19   :  { %v187_v8 = vpop.eup %186 }
  0x1a   :  { %v189_v9 = vpop.eup %188  ;;  %v88_v10 = vadd.f32 1.0, %v187_v8 }
  0x1b   :  { %v89_v11 = vadd.f32 1.0, %v189_v9 }
  0x1c   :  { %190 = vrcp.f32 %v88_v10 }
  0x1d   :  { %192 = vrcp.f32 %v89_v11 }
  0x22   :  { %v191_v13 = vpop.eup %190 }
  0x23   :  { %v193_v15 = vpop.eup %192  ;;  %v100_v16 = vmul.f32 %v191_v13, %v187_v8 }
  0x24   :  { %v101_v17 = vmul.f32 %v193_v15, %v189_v9 }
  0x25   :  { %v102_v19 = vsel %vm98_vm0, %v191_v13, %v100_v16 }
  0x26   :  { %v103_v21 = vsel %vm99_vm1, %v193_v15, %v101_v17  ;;  %v104_v22 = vmul.f32 %v102_v19, %v72_v12  ;;  %v108_v23 = vsub.f32 1.0, %v102_v19 }
  0x27   :  { %v105_v24 = vmul.f32 %v103_v21, %v73_v14  ;;  %v109_v25 = vsub.f32 1.0, %v103_v21 }
  0x28   :  { %v110_v26 = vmul.f32 %v108_v23, %v106_v18 }
  0x29   :  { %v111_v27 = vmul.f32 %v109_v25, %v107_v20 }
  0x2a   :  { %v112_v28 = vadd.f32 %v110_v26, %v104_v22 }
  0x2b   :  { %v113_v29 = vadd.f32 %v111_v27, %v105_v24 }
  0x2c   :  { %v120_v30 = vsub.f32 1.0, %v112_v28 }
  0x2d   :  { %v121_v31 = vsub.f32 1.0, %v113_v29 }
  0x2e   :  { %v122_v32 = vmax.f32 %v120_v30, 0.0 }
  0x2f   :  { %v123_v33 = vmax.f32 %v121_v31, 0.0 }
  0x30   :  { %194 = vrsqrt.f32 %v122_v32  ;;  %vm131_vm2 = vcmp.eq.f32.partialorder %v122_v32, inf  ;;  %v134_v63 = vand.u32 2147483648, %v122_v32  ;;  %vm133_vm3 = vcmp.eq.f32.partialorder %v122_v32, 0.0 }
  0x31   :  { %196 = vrsqrt.f32 %v123_v33  ;;  %vm143_vm4 = vcmp.eq.f32.partialorder %v123_v33, inf  ;;  %v146_v2 = vand.u32 2147483648, %v123_v33  ;;  %vm145_vm5 = vcmp.eq.f32.partialorder %v123_v33, 0.0 }
  0x32   :  { %198 = vlog2.f32 %v88_v10 }
  0x33   :  { %200 = vlog2.f32 %v89_v11 }
  0x36   :  { %v195_v34 = vpop.eup %194 }
  0x37   :  { %v197_v37 = vpop.eup %196  ;;  %v125_v38 = vmul.f32 %v195_v34, %v122_v32 }
  0x38   :  { %v199_v39 = vpop.eup %198  ;;  %v137_v42 = vmul.f32 %v197_v37, %v123_v33 }
  0x39   :  { %v201_v43 = vpop.eup %200  ;;  %v126_v44 = vmul.f32 %v195_v34, %v125_v38  ;;  %v91_v49 = vmul.f32 0.6931472, %v199_v39 }
  0x3a   :  { %v138_v48 = vmul.f32 %v197_v37, %v137_v42  ;;  %v93_v54 = vmul.f32 0.6931472, %v201_v43 }
  0x3b   :  { %v127_v52 = vmul.f32 0.5, %v126_v44  ;;  %v94_v58 = vadd.f32 %v91_v49, %v86_v45 }
  0x3c   :  { %v139_v55 = vmul.f32 0.5, %v138_v48  ;;  %v95_v62 = vadd.f32 %v93_v54, %v87_v53 }
  0x3d   :  { %v128_v56 = vsub.f32 1.5, %v127_v52  ;;  %v150_v5 = vmul.f32 %v118_v59, %v94_v58 }
  0x3e   :  { %v140_v57 = vsub.f32 1.5, %v139_v55  ;;  %v151_v8 = vmul.f32 %v119_v60, %v95_v62 }
  0x3f   :  { %v129_v61 = vmul.f32 %v195_v34, %v128_v56 }
  0x40   :  { %v141_v0 = vmul.f32 %v197_v37, %v140_v57 }
  0x41   :  { %v130_v1 = vmul.f32 %v129_v61, %v122_v32 }
  0x42   :  { %v142_v3 = vmul.f32 %v141_v0, %v123_v33 }
  0x43   :  { %v132_v4 = vsel %vm131_vm2, %v122_v32, %v130_v1 }
  0x44   :  { %v135_v6 = vsel %vm133_vm3, %v134_v63, %v132_v4  ;;  %v144_v7 = vsel %vm143_vm4, %v123_v33, %v142_v3 }
  0x45   :  { %v147_v9 = vsel %vm145_vm5, %v146_v2, %v144_v7  ;;  %v148_v10 = vmul.f32 %v135_v6, %v122_v32 }
  0x46   :  { %v149_v11 = vmul.f32 %v147_v9, %v123_v33 }
  0x47   :  { %v152_v12 = vmul.f32 %v150_v5, %v148_v10 }
  0x48   :  { %v153_v13 = vmul.f32 %v151_v8, %v149_v11 }
  0x4a   :  { %v154_v14 = vadd.f32 %v153_v13, %v152_v12 }
  0x4c   :  { %157 = vst [vmem:[#allocation7] sm:$0xff] %v154_v14 }
  0x4d   :  { %168 = dma.vmem_to_hbm [thread:$0]  %s164_s1, 128, %s166_s23, [#allocation4]  }
  0x4e   :  { %278 = dma.done.wait [#allocation4], 128  }
  0x4f   :  { %279 = vsyncadd [#allocation4], 4294967168 }
  0x50   :  { %173 = vsyncpa [#allocation3], 1 }
  0x51   :  { %174 = vsyncpa [#allocation6], 1 }
  0x52   :  { %175 = vsyncpa [#allocation4], 1 }

</bundles_post_ra>
